<compile_context>
chip_gen: v6e
topology: v6e:2x2x1
jax: 0.10.0
libtpu: 0.0.40
codegen_flags: <defaults>
</compile_context>

<pallas_src>
import functools

import jax
import jax.numpy as jnp
from jax.experimental import pallas as pl
from jax.experimental.pallas import tpu as pltpu


def _se_kernel(x_ref, w1t_ref, b1_ref, w2_ref, b2_ref, o_ref, *, inv_hw):
    # x_ref : (CR, HWL)  folded/padded activation slab for one batch element
    # w1t_ref: (CR, R)   fold-expanded W1^T  (row c*k+j holds W1[:, c])
    # b1_ref : (1, R)    lane-dense bias
    # w2_ref : (CR, R)   fold-expanded W2    (row c*k+j holds W2[c, :])
    # b2_ref : (CR, 1)   fold-expanded bias
    # o_ref  : (CR, HWL)

    # ---- squeeze: global average pool (lane reduction) ----------------------
    # Padded lanes / padded rows are zero, so they add nothing; divide by the
    # true H*W. Do not bind the slab to a long-lived temp.
    row_sum = jnp.sum(x_ref[...].astype(jnp.float32), axis=-1,
                      keepdims=True)                                   # (CR, 1)
    pooled = row_sum * inv_hw                                          # (CR, 1)

    # ---- excite: tiny matvecs on VPU/XLU (no MXU, N=1 would waste it) -------
    # h[r] = sum_c W1[r, c] * pooled[c]; the fold-repeated rows of w1t sum to
    # exactly the per-channel pooled contribution.
    h = jnp.sum(w1t_ref[...] * pooled, axis=0, keepdims=True) + b1_ref[...]  # (1, R)
    h = h * jax.nn.sigmoid(h)                                          # SiLU
    s = jnp.sum(w2_ref[...] * h, axis=-1, keepdims=True) + b2_ref[...]  # (CR, 1)
    gate = jax.nn.sigmoid(s)                                           # (CR, 1)

    # ---- scale: re-read x from VMEM so the slab is not live across SE math --
    o_ref[...] = (x_ref[...].astype(jnp.float32) * gate).astype(o_ref.dtype)


def se_attention(x, w1, b1, w2, b2):
    """x: (B, C, H, W); w1: (R, C); b1: (R,); w2: (C, R); b2: (C,). Returns (B, C, H, W)."""
    B, C, H, W = x.shape
    R = w1.shape[0]
    HW = H * W

    # Fold spatial into the sublane axis when C < 8 so vregs are fully used,
    # and pad the lane axis to a multiple of 128 for unmasked stores.
    k = max(1, 8 // C)                               # fold factor
    hw_pad = ((HW + 128 * k - 1) // (128 * k)) * (128 * k)   # multiple of k*128
    hw_lane = hw_pad // k                            # folded lane width (mult of 128)
    cr = C * k                                       # folded row count
    cr_pad = ((cr + 7) // 8) * 8                     # sublane-aligned rows

    # --- prepare activations: zero-pad lanes, fold, zero-pad rows ------------
    x_flat = x.reshape(B, C, HW)
    x_p = jnp.zeros((B, C, hw_pad), x.dtype).at[:, :, :HW].set(x_flat)
    x_fold = x_p.reshape(B, cr, hw_lane)
    if cr_pad != cr:
        x_fold = jnp.zeros((B, cr_pad, hw_lane), x.dtype).at[:, :cr, :].set(x_fold)

    # --- fold-expand the 1x1-conv weights so the kernel body is fold-agnostic
    w1t = jnp.repeat(w1.T.astype(jnp.float32), k, axis=0)                 # (cr, R)
    w2f = jnp.repeat(w2.astype(jnp.float32), k, axis=0)                   # (cr, R)
    b2f = jnp.repeat(b2.reshape(C, 1).astype(jnp.float32), k, axis=0)     # (cr, 1)
    if cr_pad != cr:
        w1t = jnp.zeros((cr_pad, R), jnp.float32).at[:cr, :].set(w1t)
        w2f = jnp.zeros((cr_pad, R), jnp.float32).at[:cr, :].set(w2f)
        b2f = jnp.zeros((cr_pad, 1), jnp.float32).at[:cr, :].set(b2f)
    b1r = b1.reshape(1, R).astype(jnp.float32)                            # lane-dense

    kernel = functools.partial(_se_kernel, inv_hw=1.0 / float(HW))

    out = pl.pallas_call(
        kernel,
        out_shape=jax.ShapeDtypeStruct((B, cr_pad, hw_lane), x.dtype),
        grid_spec=pltpu.PrefetchScalarGridSpec(
            num_scalar_prefetch=0,
            grid=(B,),
            in_specs=[
                # batch dim squeezed (None) -> kernel sees a 2-D (CR, HWL) ref
                pl.BlockSpec((None, cr_pad, hw_lane), lambda b: (b, 0, 0)),
                pl.BlockSpec((cr_pad, R), lambda b: (0, 0)),
                pl.BlockSpec((1, R), lambda b: (0, 0)),
                pl.BlockSpec((cr_pad, R), lambda b: (0, 0)),
                pl.BlockSpec((cr_pad, 1), lambda b: (0, 0)),
            ],
            out_specs=pl.BlockSpec((None, cr_pad, hw_lane), lambda b: (b, 0, 0)),
        ),
        compiler_params=pltpu.CompilerParams(
            dimension_semantics=("parallel",),
            # above default scoped limits on v5e/v6e, with headroom on v7x (64 MiB)
            vmem_limit_bytes=48 * 1024 * 1024,
        ),
    )(x_fold, w1t, b1r, w2f, b2f)

    # unfold + strip padding
    out = out[:, :cr, :].reshape(B, C, hw_pad)[:, :, :HW]
    return out.reshape(B, C, H, W)


def _ref_se_attention(x, w1, b1, w2, b2):
    # pure-JAX reference matching the PyTorch module
    pooled = jnp.mean(x, axis=(2, 3))                        # (B, C)
    h = pooled @ w1.T + b1                                   # (B, R)
    h = h * jax.nn.sigmoid(h)                                # SiLU
    s = h @ w2.T + b2                                        # (B, C)
    gate = jax.nn.sigmoid(s)[:, :, None, None]
    return x * gate


if __name__ == "__main__":
    key = jax.random.PRNGKey(0)
    B, C, H, W = 2, 4, 16, 16
    R = 16  # reduced_dim (PyTorch default)

    k_x, k_w1, k_b1, k_w2, k_b2 = jax.random.split(key, 5)
    x = jax.random.normal(k_x, (B, C, H, W), dtype=jnp.float32)
    # Conv2d 1x1 weights squeezed to 2-D
    w1 = jax.random.normal(k_w1, (R, C), dtype=jnp.float32) * 0.1
    b1 = jax.random.normal(k_b1, (R,), dtype=jnp.float32) * 0.1
    w2 = jax.random.normal(k_w2, (C, R), dtype=jnp.float32) * 0.1
    b2 = jax.random.normal(k_b2, (C,), dtype=jnp.float32) * 0.1

    out = se_attention(x, w1, b1, w2, b2)
    out = jax.block_until_ready(out)

    ref = _ref_se_attention(x, w1, b1, w2, b2)
    assert out.shape == (B, C, H, W)
    assert jnp.allclose(out, ref, atol=1e-5, rtol=1e-5), "mismatch vs reference"

    print("KERNEL_OK")
</pallas_src>

<mosaic_0001>
module attributes {stable_mosaic.version = 11 : i64} {
  func.func @_se_kernel(%arg0: i32, %arg1: memref<1x8x128xf32, #tpu.memory_space<vmem>>, %arg2: memref<8x16xf32, #tpu.memory_space<vmem>>, %arg3: memref<1x16xf32, #tpu.memory_space<vmem>>, %arg4: memref<8x16xf32, #tpu.memory_space<vmem>>, %arg5: memref<8x1xf32, #tpu.memory_space<vmem>>, %arg6: memref<1x8x128xf32, #tpu.memory_space<vmem>>) attributes {dimension_semantics = [#tpu.dimension_semantics<parallel>], iteration_bounds = array<i64: 2>, scalar_prefetch = 0 : i64, scratch_operands = 0 : i64, tpu.core_type = #tpu.core_type<tc>, window_params = [{transform_indices = @transform_0, window_bounds = array<i64: 1, 8, 128>}, {pipeline_mode = #tpu.pipeline_mode<synchronous>, transform_indices = @transform_1, window_bounds = array<i64: 8, 16>}, {pipeline_mode = #tpu.pipeline_mode<synchronous>, transform_indices = @transform_2, window_bounds = array<i64: 1, 16>}, {pipeline_mode = #tpu.pipeline_mode<synchronous>, transform_indices = @transform_3, window_bounds = array<i64: 8, 16>}, {pipeline_mode = #tpu.pipeline_mode<synchronous>, transform_indices = @transform_4, window_bounds = array<i64: 8, 1>}, {transform_indices = @transform_5, window_bounds = array<i64: 1, 8, 128>}]} {
    %c0 = arith.constant 0 : index
    %c0_0 = arith.constant 0 : index
    %c0_1 = arith.constant 0 : index
    %0 = vector.load %arg1[%c0, %c0_0, %c0_1] : memref<1x8x128xf32, #tpu.memory_space<vmem>>, vector<1x8x128xf32>
    %1 = vector.shape_cast %0 : vector<1x8x128xf32> to vector<8x128xf32>
    %cst = arith.constant dense<0.000000e+00> : vector<8xf32>
    %2 = vector.multi_reduction <add>, %1, %cst [1] : vector<8x128xf32> to vector<8xf32>
    %3 = vector.shape_cast %2 : vector<8xf32> to vector<8x1xf32>
    %cst_2 = arith.constant 3.906250e-03 : f32
    %4 = vector.broadcast %cst_2 : f32 to vector<8x1xf32>
    %5 = arith.mulf %3, %4 : vector<8x1xf32>
    %c0_3 = arith.constant 0 : index
    %c0_4 = arith.constant 0 : index
    %6 = vector.load %arg2[%c0_3, %c0_4] : memref<8x16xf32, #tpu.memory_space<vmem>>, vector<8x16xf32>
    %7 = vector.broadcast %5 : vector<8x1xf32> to vector<8x16xf32>
    %8 = arith.mulf %6, %7 : vector<8x16xf32>
    %cst_5 = arith.constant dense<0.000000e+00> : vector<16xf32>
    %9 = vector.multi_reduction <add>, %8, %cst_5 [0] : vector<8x16xf32> to vector<16xf32>
    %10 = vector.shape_cast %9 : vector<16xf32> to vector<1x16xf32>
    %c0_6 = arith.constant 0 : index
    %c0_7 = arith.constant 0 : index
    %11 = vector.load %arg3[%c0_6, %c0_7] : memref<1x16xf32, #tpu.memory_space<vmem>>, vector<1x16xf32>
    %12 = arith.addf %10, %11 : vector<1x16xf32>
    %13 = arith.negf %12 : vector<1x16xf32>
    %14 = math.exp %13 : vector<1x16xf32>
    %cst_8 = arith.constant 1.000000e+00 : f32
    %15 = vector.broadcast %cst_8 : f32 to vector<1x16xf32>
    %16 = arith.addf %15, %14 : vector<1x16xf32>
    %17 = arith.divf %15, %16 : vector<1x16xf32>
    %18 = arith.mulf %12, %17 : vector<1x16xf32>
    %c0_9 = arith.constant 0 : index
    %c0_10 = arith.constant 0 : index
    %19 = vector.load %arg4[%c0_9, %c0_10] : memref<8x16xf32, #tpu.memory_space<vmem>>, vector<8x16xf32>
    %20 = vector.broadcast %18 : vector<1x16xf32> to vector<8x16xf32>
    %21 = arith.mulf %19, %20 : vector<8x16xf32>
    %cst_11 = arith.constant dense<0.000000e+00> : vector<8xf32>
    %22 = vector.multi_reduction <add>, %21, %cst_11 [1] : vector<8x16xf32> to vector<8xf32>
    %23 = vector.shape_cast %22 : vector<8xf32> to vector<8x1xf32>
    %c0_12 = arith.constant 0 : index
    %c0_13 = arith.constant 0 : index
    %24 = vector.load %arg5[%c0_12, %c0_13] : memref<8x1xf32, #tpu.memory_space<vmem>>, vector<8x1xf32>
    %25 = arith.addf %23, %24 : vector<8x1xf32>
    %26 = arith.negf %25 : vector<8x1xf32>
    %27 = math.exp %26 : vector<8x1xf32>
    %cst_14 = arith.constant 1.000000e+00 : f32
    %28 = vector.broadcast %cst_14 : f32 to vector<8x1xf32>
    %29 = arith.addf %28, %27 : vector<8x1xf32>
    %30 = arith.divf %28, %29 : vector<8x1xf32>
    %c0_15 = arith.constant 0 : index
    %c0_16 = arith.constant 0 : index
    %c0_17 = arith.constant 0 : index
    %31 = vector.load %arg1[%c0_15, %c0_16, %c0_17] : memref<1x8x128xf32, #tpu.memory_space<vmem>>, vector<1x8x128xf32>
    %32 = vector.shape_cast %31 : vector<1x8x128xf32> to vector<8x128xf32>
    %33 = vector.broadcast %30 : vector<8x1xf32> to vector<8x128xf32>
    %34 = arith.mulf %32, %33 : vector<8x128xf32>
    %c0_18 = arith.constant 0 : index
    %c0_19 = arith.constant 0 : index
    %c0_20 = arith.constant 0 : index
    %35 = vector.load %arg6[%c0_18, %c0_19, %c0_20] : memref<1x8x128xf32, #tpu.memory_space<vmem>>, vector<1x8x128xf32>
    %36 = vector.shape_cast %35 : vector<1x8x128xf32> to vector<8x128xf32>
    %37 = vector.shape_cast %34 : vector<8x128xf32> to vector<1x8x128xf32>
    tpu.vector_store %arg6[%c0_18, %c0_19, %c0_20], %37 {strides = array<i32>} : memref<1x8x128xf32, #tpu.memory_space<vmem>>, vector<1x8x128xf32>,
    return
  }
  func.func @transform_0(%arg0: i32) -> (i32, i32, i32) {
    %c0_i32 = arith.constant 0 : i32
    %c0_i32_0 = arith.constant 0 : i32
    %c0_i32_1 = arith.constant 0 : i32
    return %arg0, %c0_i32, %c0_i32_0 : i32, i32, i32
  }
  func.func @transform_1(%arg0: i32) -> (i32, i32) {
    %c0_i32 = arith.constant 0 : i32
    %c0_i32_0 = arith.constant 0 : i32
    %c0_i32_1 = arith.constant 0 : i32
    return %c0_i32, %c0_i32_0 : i32, i32
  }
  func.func @transform_2(%arg0: i32) -> (i32, i32) {
    %c0_i32 = arith.constant 0 : i32
    %c0_i32_0 = arith.constant 0 : i32
    %c0_i32_1 = arith.constant 0 : i32
    return %c0_i32, %c0_i32_0 : i32, i32
  }
  func.func @transform_3(%arg0: i32) -> (i32, i32) {
    %c0_i32 = arith.constant 0 : i32
    %c0_i32_0 = arith.constant 0 : i32
    %c0_i32_1 = arith.constant 0 : i32
    return %c0_i32, %c0_i32_0 : i32, i32
  }
  func.func @transform_4(%arg0: i32) -> (i32, i32) {
    %c0_i32 = arith.constant 0 : i32
    %c0_i32_0 = arith.constant 0 : i32
    %c0_i32_1 = arith.constant 0 : i32
    return %c0_i32, %c0_i32_0 : i32, i32
  }
  func.func @transform_5(%arg0: i32) -> (i32, i32, i32) {
    %c0_i32 = arith.constant 0 : i32
    %c0_i32_0 = arith.constant 0 : i32
    %c0_i32_1 = arith.constant 0 : i32
    return %arg0, %c0_i32, %c0_i32_0 : i32, i32, i32
  }
}

</mosaic_0001>

<bundles_post_ra>
// kernel: tpu_custom_call.1
= control target key start
LH: loop header
LB: loop body
LE: loop exit
PB: predicated region body
PF: predicated region fallthrough
CT: control target
= control target key end

     0   :  { %10 = vsyncpa [#allocation3], 0  ;;  %s817_s0 = inlined_call_operand.hbm [shape: f32[2,8,128], index: 0, kind: input, shape index: {}]   ;;  %s818_s1 = inlined_call_operand.vmem [shape: f32[8,16], index: 1, kind: input, shape index: {}]   ;;  %s819_s2 = inlined_call_operand.vmem [shape: f32[1,16], index: 2, kind: input, shape index: {}]   ;;  %s820_s3 = inlined_call_operand.hbm [shape: f32[8,16], index: 3, kind: input, shape index: {}]   ;;  %s821_s4 = inlined_call_operand.vmem [shape: f32[8,1], index: 4, kind: input, shape index: {}]   ;;  %s822_s5 = inlined_call_operand.hbm [shape: f32[2,8,128], index: 5, kind: output, shape index: {}]  }
   0x1   :  { %12 = vsyncpa [#allocation3 + $0x1], 0 }
   0x2   :  { %13 = vsyncpa [#allocation6], 0 }
   0x3   :  { %14 = vsyncpa [#allocation4], 0 }
   0x4   :  { %16 = vsyncpa [#allocation4 + $0x1], 0  ;;  %s636_s18 = smov 0   ;;  %s638_s19 = smov 0  }
   0x5   :  { %s640_s20 = smov 0   ;;  %s642_s21 = smov 0  }
   0x6 LB: > { %s657_s22 = sadd.s32 4294967295, %s600_s21   ;;  %s394_s23 = sadd.s32 4294967294, %s600_s21   ;;  %s600_s21 = sphi %s642_s21, %s845_s21   ;;  %s596_s20 = sphi %s640_s20, %s844_s20   ;;  %s592_s19 = sphi %s638_s19, %s843_s19   ;;  %s588_s18 = sphi %s636_s18, %s842_s18  }
   0x7   : > { %p42_p0 = scmp.ne.s32.totalorder %s592_s19, %s588_s18  ;;  %p823_p1 = scmp.eq.s32.totalorder %s657_s22, 0 }
   0x8   : > { %p156_p3 = scmp.eq.s32.totalorder %s394_s23, 1  ;;  %p395_p5 = scmp.ge.s32.totalorder %s600_s21, 1 }
   0x9   : > { %p666_p4 = por %p823_p1, %p42_p0  ;;  %p163_p7 = scmp.lt.s32.totalorder %s600_s21, 3 }
   0xa   : > { %p671_p6 = por %p156_p3, %p42_p0  ;;  %s602_s27 = smov [#allocation5]  }
   0xb   : > { %s827_s24 = scalar_select %p666_p4, 1, 0 }
   0xc   : > { %s828_s25 = scalar_select %p671_p6, 1, 0 }
   0xd   : > { %p676_p8 = pnand %p395_p5, %p163_p7  ;;  %s182_s28 = sshll.u32 %s602_s27, 4  ;;  %s183_s28 = int_to_ptr.vmem [resolvable:$true] %s182_s28 }
   0xe   : > { %s684_s29 = sadd.s32 1, %s600_s21   ;;  %s29_s8 = sadd.s32 1, %s596_s20 }
   0xf   : > { %s829_s26 = scalar_select %p676_p8, 1, 0 }
  0x10   : > { %p418_p10 = pneg %p676_p8  ;;  %s26_s6 = ssub.s32 %s600_s21, %s684_s29 }
  0x11   : > { %p694_p12 = scmp.eq.s32.totalorder %s26_s6, 0  ;;  %p36_p13 = scmp.ne.s32.totalorder %s596_s20, %s592_s19 }
  0x12   : > { %p688_p11 = pnand %p418_p10, %p823_p1  ;;  %s489_s9 = scalar_lea.vmem %s183_s28, 128 }
  0x13   : > { %p490_p3 = scmp.ne.s32.totalorder %s183_s28, %s489_s9  ;;  %p497_p9 = scmp.lt.s32.totalorder %s183_s28, %s183_s28 }
  0x14   : > { %p480_p0 = pneg %p688_p11  ;;  %p498_p2 = scmp.lt.s32.totalorder %s489_s9, %s489_s9 }
  0x16   : > { %p492_p5 = pnand %p490_p3, %p480_p0  ;;  %p499_p10 = por %p498_p2, %p497_p9 }
  0x18   : > { %p493_p7 = pneg %p492_p5 }
  0x1a   : > { %p500_p1 = pnand %p499_p10, %p493_p7 }
  0x1c   : > { %503 = shalt.err (!%p500_p1)
}
  0x1d   : > { %421 = dma.hbm_to_vmem [thread:$0]  (!%p688_p11), %s820_s3, 128, %s183_s28, [#allocation6]  }
  0x1e   : > { %s711_s12 = scalar_select %p694_p12, %s596_s20, %s29_s8  }
  0x1f   : > { %p37_p1 = scmp.eq.s32.totalorder %s600_s21, 0  ;;  %p832_p2 = scmp.eq.s32.totalorder %s657_s22, 1 }
  0x20   : > { %p431_p0 = scmp.lt.s32.totalorder %s600_s21, 2  ;;  %s196_s14 = sand.u32 1, %s596_s20  }
  0x21   : > { %p719_p9 = por %p832_p2, %p36_p13  ;;  %p38_p3 = por %p37_p1, %p36_p13 }
  0x22   : > { %s398_s15 = sshll.u32 %s196_s14, 3  ;;  %s399_s16 = sshll.u32 %s600_s21, 7 }
  0x23   : > { %s833_s13 = scalar_select %p719_p9, 1, 0 }
  0x24   : > { %s732_s27 = scalar_lea.hbm %s817_s0, %s399_s16  ;;  %s200_s28 = scalar_lea.vmem [#allocation2], %s398_s15 }
  0x25   : > { %s207_s30 = sshll.u32 %s200_s28, 4  ;;  %p734_p11 = pnand %p431_p0, %p38_p3  ;;  %s208_s30 = int_to_ptr.vmem [resolvable:$true] %s207_s30 }
  0x26   : > { %s197_s7 = scalar_lea.sflag [#allocation3], %s196_s14  ;;  %s504_s8 = scalar_lea.hbm %s732_s27, 128 }
  0x27   : > { %p505_p12 = scmp.ne.s32.totalorder %s732_s27, %s504_s8  ;;  %p506_p13 = pneg %p734_p11 }
  0x28   : > { %s509_s11 = scalar_lea.hbm %s817_s0, 256  ;;  %p510_p10 = scmp.lt.s32.totalorder %s732_s27, %s817_s0 }
  0x29   : > { %p507_p5 = pnand %p506_p13, %p505_p12  ;;  %p511_p1 = scmp.lt.s32.totalorder %s509_s11, %s504_s8 }
  0x2b   : > { %p508_p7 = pneg %p507_p5  ;;  %p512_p2 = por %p511_p1, %p510_p10 }
  0x2d   : > { %p513_p0 = pnand %p512_p2, %p508_p7 }
  0x2f   : > { %516 = shalt.err (!%p513_p0)
}
  0x30   : > { %s517_s17 = scalar_lea.vmem %s208_s30, 128  ;;  %s603_s14 = smov [#allocation2]  }
  0x31   : > { %p518_p3 = scmp.ne.s32.totalorder %s208_s30, %s517_s17  ;;  %s522_s23 = sshll.u32 %s603_s14, 4  ;;  %s523_s23 = int_to_ptr.vmem [resolvable:$false] %s522_s23 }
  0x32   : > { %s524_s28 = scalar_lea.vmem %s523_s23, 256  ;;  %p525_p12 = scmp.lt.s32.totalorder %s208_s30, %s523_s23 }
  0x33   : > { %p520_p6 = pnand %p518_p3, %p506_p13  ;;  %p526_p5 = scmp.lt.s32.totalorder %s524_s28, %s517_s17 }
  0x35   : > { %p521_p9 = pneg %p520_p6  ;;  %p527_p4 = por %p526_p5, %p525_p12 }
  0x37   : > { %p528_p8 = pnand %p527_p4, %p521_p9 }
  0x39   : > { %531 = shalt.err (!%p528_p8)
}
  0x3a   : > { %425 = dma.hbm_to_vmem [thread:$0]  (!%p734_p11), %s732_s27, 128, %s208_s30, %s197_s7  }
  0x3b   : > { %p835_p7 = scmp.ne.s32.totalorder %s829_s26, 0 }
  0x3c   : > { %s755_s8 = sand.u32 (!%p835_p7), 1, %s592_s19   ;;  %p836_p4 = scmp.ne.s32.totalorder (!%p835_p7), %s827_s24, 0 }
  0x3d   : > { %216 = sbr.rel (%p835_p7) target bundleno = 578 (0x242), region = 40  ;;  %s401_s9 = sshll.u32 (!%p835_p7), %s755_s8, 3 }
  0x3e   : > { %s219_s10 = scalar_lea.sflag (!%p835_p7), [#allocation3], %s755_s8  ;;  %s222_s11 = scalar_lea.vmem (!%p835_p7), [#allocation2], %s401_s9 }
  0x42   : > { %575 = dma.done.wait (%p836_p4), %s219_s10, 128  }
  0x43   : > { %577 = vsyncadd (%p836_p4), %s219_s10, 4294967168  ;;  %p837_p6 = scmp.eq.s32.totalorder %s657_s22, 0 }
  0x45   : > { %579 = dma.done.wait (%p837_p6), [#allocation6], 128   ;;  %p838_p8 = pmov %p837_p6 }
  0x46   : > { %v253_v0 = vld [vmem:[%s222_s11] sm:$0xff]  ;;  %vm259_vm0 = vcmask 130048   ;;  %v277_v17 = vlaneseq  ;;  %v276_v22 = vld [vmem:[#allocation5] sm:$0xff]  ;;  %v604_v26 = vmov 0   ;;  %s407_s16 = sshll.u32 %s657_s22, 7  ;;  %s252_s15 = scalar_lea.vmem [#allocation7], %s401_s9 }
  0x47   : > { %581 = vsyncadd (%p838_p8), [#allocation6], 4294967168  ;;  %254 = vadd.xlane.f32.xlu0 %v253_v0  ;;  %v257_v1 = vld [vmem:[%s818_s1] sm:$0xff]  ;;  %468 = vset.pattern.permute.xlu1 %v604_v26  ;;  %s314_s17 = sshll.u32 %s252_s15, 4  ;;  %s312_s28 = scalar_lea.hbm %s822_s5, %s407_s16  ;;  %s315_s17 = int_to_ptr.vmem [resolvable:$true] %s314_s17 }
  0x48   : > { %v267_v11 = vld [vmem:[%s819_s2] sm:$0x1]  ;;  %v278_v18 = vshrl.u32 %v277_v17, 7  ;;  %469 = vset.pattern.permute.xlu0 %v604_v26  ;;  %s301_s10 = scalar_lea.sflag [#allocation4], %s755_s8  ;;  %s532_s11 = scalar_lea.vmem %s315_s17, 128 }
  0x49   : > { %v285_v27 = vld [vmem:[%s821_s4] sm:$0xff]  ;;  %p533_p9 = scmp.ne.s32.totalorder %s315_s17, %s532_s11  ;;  %p839_p11 = scmp.ne.s32.totalorder %s833_s13, 0 }
  0x4a   : > { %v279_v19 = vsub.s32 0, %v278_v18  ;;  %s605_s26 = smov [#allocation7]  }
  0x4b   : > { %p534_p13 = pnand %p533_p9, %p839_p11  ;;  %s536_s27 = sshll.u32 %s605_s26, 4  ;;  %s537_s27 = int_to_ptr.vmem [resolvable:$false] %s536_s27 }
  0x4c   : > { %s538_s22 = scalar_lea.vmem %s537_s27, 256  ;;  %p539_p1 = scmp.lt.s32.totalorder %s315_s17, %s537_s27 }
  0x4d   : > { %p535_p10 = pneg %p534_p13  ;;  %p540_p2 = scmp.lt.s32.totalorder %s538_s22, %s532_s11 }
  0x4f   : > { %p541_p0 = por %p540_p2, %p539_p1 }
  0x51   : > { %p542_p3 = pnand %p541_p0, %p535_p10 }
  0xd0   : > { %v255_v2 = vpop.xlane.xlu0 %254 }
  0xd1   : > { %v256_v3 = vmul.f32 0.00390625, %v255_v2 }
  0xd3   : > { %v258_v4 = vmul.f32 %v257_v1, %v256_v3 }
  0xd5   : > { %v260_v5 = vsel %vm259_vm0, %v258_v4, 0.0 }
  0xd6   : > { %v261_v6 = vrot.slane %v260_v5, 4 }
  0xd8   : > { %v262_v7 = vadd.f32 %v261_v6, %v260_v5 }
  0xda   : > { %v263_v8 = vrot.slane %v262_v7, 2 }
  0xdc   : > { %v264_v9 = vadd.f32 %v263_v8, %v262_v7 }
  0xde   : > { %v265_v10 = vrot.slane %v264_v9, 1 }
  0xe0   : > { %v266_v12 = vadd.f32 %v265_v10, %v264_v9 }
  0xe2   : > { %v268_v13 = vadd.f32 %v267_v11, %v266_v12 }
  0xe4   : > { %v404_v14 = vmul.f32 -1.442695, %v268_v13 }
  0xe6   : > { %470 = vpow2.f32 %v404_v14 }
  0xf3   : > { %v471_v15 = vpop.eup %470 }
  0xf4   : > { %v272_v16 = vadd.f32 1.0, %v471_v15 }
  0xf6   : > { %472 = vrcp.f32 %v272_v16 }
 0x103   : > { %v473_v20 = vpop.eup %472 }
 0x104   : > { %v275_v21 = vmul.f32 %v473_v20, %v268_v13 }
 0x106   : > { %v280_v23 = vrot.slane %v275_v21, %v279_v19 }
 0x108   : > { %v281_v24 = vmul.f32 %v280_v23, %v276_v22 }
 0x10a   : > { %v282_v25 = vsel %vm259_vm0, %v281_v24, 0.0 }
 0x10b   : > { %283 = vadd.xlane.f32.xlu0 %v282_v25 }
 0x194   : > { %v284_v28 = vpop.xlane.xlu0 %283 }
 0x195   : > { %v286_v29 = vadd.f32 %v285_v27, %v284_v28 }
 0x197   : > { %v405_v30 = vmul.f32 -1.442695, %v286_v29 }
 0x199   : > { %474 = vpow2.f32 %v405_v30 }
 0x1a6   : > { %v475_v31 = vpop.eup %474 }
 0x1a7   : > { %v290_v32 = vadd.f32 1.0, %v475_v31 }
 0x1a9   : > { %476 = vrcp.f32 %v290_v32 }
 0x1b6   : > { %v477_v33 = vpop.eup %476 }
 0x1b7   : > { %295 = vperm.xlu1 %468, %v477_v33  }
 0x232   : > { %v296_v34 = vpop.permute.xlu1 %295 }
 0x233   : > { %v298_v35 = vmul.f32 %v296_v34, %v253_v0 }
 0x235   : > { %299 = vst [vmem:[%s252_s15] sm:$0xff] %v298_v35 }
 0x236   : > { %545 = shalt.err (!%p542_p3)
}
 0x237   : > { %s546_s9 = scalar_lea.hbm %s312_s28, 128  ;;  %s550_s30 = scalar_lea.hbm %s822_s5, 256 }
 0x238   : > { %p547_p12 = scmp.ne.s32.totalorder %s312_s28, %s546_s9  ;;  %p551_p4 = scmp.lt.s32.totalorder %s312_s28, %s822_s5 }
 0x239   : > { %p552_p6 = scmp.lt.s32.totalorder %s550_s30, %s546_s9 }
 0x23a   : > { %p548_p5 = pnand %p547_p12, %p839_p11 }
 0x23b   : > { %p553_p8 = por %p552_p6, %p551_p4 }
 0x23c   : > { %p549_p7 = pneg %p548_p5 }
 0x23e   : > { %p554_p9 = pnand %p553_p8, %p549_p7 }
 0x240   : > { %557 = shalt.err (!%p554_p9)
}
 0x241   : > { %416 = dma.vmem_to_hbm [thread:$0]  (%p839_p11), %s315_s17, 128, %s312_s28, %s301_s10  }
 0x242 PF: > { %s326_s16 = sand.u32 1, %s588_s18   ;;  %p840_p13 = scmp.ne.s32.totalorder %s828_s25, 0 }
 0x243   : > { %p841_p10 = scmp.ge.s32.totalorder %s600_s21, 2  ;;  %s327_s15 = scalar_lea.sflag [#allocation4], %s326_s16 }
 0x245   : > { %p427_p1 = pnand %p841_p10, %p840_p13 }
 0x247   : > { %p428_p2 = pneg %p427_p1 }
 0x249   : > { %583 = dma.done.wait (%p428_p2), %s327_s15, 128  }
 0x24a   : > { %585 = vsyncadd (%p428_p2), %s327_s15, 4294967168  ;;  %p19_p0 = scmp.ge.s32.totalorder %s684_s29, 4   ;;  %s842_s18 = smov %s592_s19 }
 0x24b   : > { %s843_s19 = smov %s596_s20  ;;  %s844_s20 = smov %s711_s12 }
 0x24c   : > { %s845_s21 = smov %s684_s29  ;;  %21 = sbr.rel (!%p19_p0) target bundleno = 6 (0x6), region = 89 }
 0x251   :  { %332 = vsyncpa [#allocation3], 1 }
 0x252   :  { %334 = vsyncpa [#allocation3 + $0x1], 1 }
 0x253   :  { %335 = vsyncpa [#allocation6], 1 }
 0x254   :  { %336 = vsyncpa [#allocation4], 1 }
 0x255   :  { %338 = vsyncpa [#allocation4 + $0x1], 1 }

</bundles_post_ra>
